<compile_context>
chip_gen: v5e
topology: v5e:2x2
jax: 0.10.0
libtpu: 0.0.40
codegen_flags: <defaults>
</compile_context>

<pallas_src>
import functools

import jax
import jax.numpy as jnp
from jax.experimental import pallas as pl
from jax.experimental.pallas import tpu as pltpu

BN_EPS = 1e-5
KL_EPS = 1e-12  # matches self.eps in the PyTorch Bottleneck


# ----------------------------------------------------------------------------
# Fused Pallas kernel
# ----------------------------------------------------------------------------
# Weight-stack layout (all (P, P), bf16):
#   0 enc1, 1 enc2, 2 enc3, 3 fcb1, 4 fc_mean, 5 fc_var,
#   6 fcb2_h, 7 fcb2_cond, 8 dec1, 9 dec2, 10 dec3
# scale/shift-stack layout (all (P,), f32):
#   0 bn0, 1 enc1, 2 enc2, 3 enc3, 4 fcb1, 5 fcb2, 6 dec1, 7 dec2, 8 dec3
# bb stack: 0 fc_mean bias, 1 fc_var bias

def fused_cvae_kernel(x_ref, ids_ref, w_ref, s_ref, t_ref, bb_ref,
                      recon_ref, err_ref, *, in_features, latent_size):
    f32 = jnp.float32
    bf16 = jnp.bfloat16

    def fc(h, wi, si):
        # Fused Linear + BatchNorm1d(eval) + ReLU (bf16 matmul, f32 accum/elementwise).
        y = jnp.dot(h.astype(bf16), w_ref[wi], preferred_element_type=f32)
        y = y * s_ref[si] + t_ref[si]
        return jnp.maximum(y, 0.0)

    # bn0 (eval-mode affine). Padded lanes have scale=shift=0, so they stay 0
    # through every layer (weights are zero-padded too).
    x_bn = x_ref[...] * s_ref[0] + t_ref[0]
    x_gt = x_bn  # x.clone() in the reference: loss compares against bn0(x)

    # Encoder (3 FC blocks) + fc_block1 (use_tanh=False -> ReLU)
    h = fc(x_bn, 0, 1)
    h = fc(h, 1, 2)
    h = fc(h, 2, 3)
    h = fc(h, 3, 4)

    # Bottleneck: KL divergence only (sampled z is discarded by the reference).
    hb = h.astype(bf16)
    mean = jnp.dot(hb, w_ref[4], preferred_element_type=f32) + bb_ref[0]
    var = jnp.dot(hb, w_ref[5], preferred_element_type=f32) + bb_ref[1]
    lane = jax.lax.broadcasted_iota(jnp.int32, mean.shape, 1)
    # Matches: -0.5 * sum(1 + var - mean**2 - exp(var + eps), dim=1)
    term = 1.0 + var - mean * mean - jnp.exp(var + KL_EPS)
    term = jnp.where(lane < latent_size, term, 0.0)  # mask padded latent lanes
    kld = -0.5 * jnp.sum(term, axis=1, keepdims=True)  # (TB, 1)

    # fc_block2: cat([h, onehot(sec), onehot(tb)]) @ W
    #          == h @ W_h + twohot @ W_cond   (in-kernel weight-row gather)
    ids = ids_ref[...]
    sec = ids[:, 0:1]   # in [0, num_classes)
    tbo = ids[:, 1:2]   # already offset by num_classes in the wrapper
    twohot = (jnp.where(lane == sec, 1.0, 0.0)
              + jnp.where(lane == tbo, 1.0, 0.0)).astype(bf16)
    y = jnp.dot(hb, w_ref[6], preferred_element_type=f32)
    y = y + jnp.dot(twohot, w_ref[7], preferred_element_type=f32)
    h2 = jnp.maximum(y * s_ref[5] + t_ref[5], 0.0)

    # Decoder (3 FC blocks)
    h2 = fc(h2, 8, 6)
    h2 = fc(h2, 9, 7)
    h2 = fc(h2, 10, 8)

    # Eval-mode loss: per-sample MSE over real features + per-sample KLd.
    # Padded lanes of both h2 and x_gt are exactly 0, so summing over all P
    # lanes and dividing by in_features is exact.
    d = h2 - x_gt
    mse = jnp.sum(d * d, axis=1, keepdims=True) * (1.0 / in_features)
    err = mse + kld

    recon_ref[...] = h2
    err_ref[...] = jnp.broadcast_to(err, err_ref.shape)  # lane-dense store


# ----------------------------------------------------------------------------
# Wrapper
# ----------------------------------------------------------------------------

def conditional_vae_forward(params, x, section_type, target_bool, *,
                            in_features, latent_size, num_classes,
                            batch_tile=8):
    W, S, T, BB = params["W"], params["scale"], params["shift"], params["bneck_bias"]
    NW, P = W.shape[0], W.shape[1]
    NS = S.shape[0]

    B = x.shape[0]
    Bp = batch_tile * ((B + batch_tile - 1) // batch_tile)

    # Zero-pad input to lane width P and batch to a multiple of the batch tile.
    x_pad = jnp.zeros((Bp, P), jnp.float32).at[:B, :x.shape[1]].set(x)
    ids = jnp.zeros((Bp, 2), jnp.int32)
    ids = ids.at[:B, 0].set(section_type.astype(jnp.int32))
    ids = ids.at[:B, 1].set(num_classes + target_bool.astype(jnp.int32))

    kernel = functools.partial(fused_cvae_kernel,
                               in_features=in_features,
                               latent_size=latent_size)

    recon_pad, err_pad = pl.pallas_call(
        kernel,
        out_shape=(jax.ShapeDtypeStruct((Bp, P), jnp.float32),
                   jax.ShapeDtypeStruct((Bp, P), jnp.float32)),
        grid_spec=pltpu.PrefetchScalarGridSpec(
            num_scalar_prefetch=0,
            grid=(Bp // batch_tile,),
            in_specs=[
                pl.BlockSpec((batch_tile, P), lambda i: (i, 0)),      # x
                pl.BlockSpec((batch_tile, 2), lambda i: (i, 0)),      # ids
                pl.BlockSpec((NW, P, P), lambda i: (0, 0, 0)),        # weight stack
                pl.BlockSpec((NS, P), lambda i: (0, 0)),              # scale stack
                pl.BlockSpec((NS, P), lambda i: (0, 0)),              # shift stack
                pl.BlockSpec((2, P), lambda i: (0, 0)),               # bottleneck biases
            ],
            out_specs=(
                pl.BlockSpec((batch_tile, P), lambda i: (i, 0)),
                pl.BlockSpec((batch_tile, P), lambda i: (i, 0)),
            ),
        ),
        compiler_params=pltpu.CompilerParams(
            dimension_semantics=("parallel",)),
    )(x_pad, ids, W, S, T, BB)

    return {
        "reconst_error": err_pad[:B, 0],
        "reconstruction": recon_pad[:B, :in_features],
    }


# ----------------------------------------------------------------------------
# Parameter construction (deterministic, PyTorch-default-like init), folded
# and padded offline.
# ----------------------------------------------------------------------------

def _init_linear(key, in_f, out_f):
    kw, kb = jax.random.split(key)
    bound = 1.0 / jnp.sqrt(jnp.float32(in_f))
    w = jax.random.uniform(kw, (out_f, in_f), jnp.float32, -bound, bound)
    b = jax.random.uniform(kb, (out_f,), jnp.float32, -bound, bound)
    return w, b


def _init_bn(key, f):
    k1, k2, k3 = jax.random.split(key, 3)
    gamma = 1.0 + 0.1 * jax.random.normal(k1, (f,), jnp.float32)
    beta = 0.1 * jax.random.normal(k2, (f,), jnp.float32)
    run_mean = 0.1 * jax.random.normal(k3, (f,), jnp.float32)
    run_var = jnp.ones((f,), jnp.float32)
    return gamma, beta, run_mean, run_var


def _fold_fc_block(key, in_f, out_f):
    """Linear + BatchNorm1d(eval) -> (Wt, scale, shift):  act((x@Wt)*s + t)."""
    kl, kbn = jax.random.split(key)
    w, b = _init_linear(kl, in_f, out_f)
    gamma, beta, rm, rv = _init_bn(kbn, out_f)
    s = gamma / jnp.sqrt(rv + BN_EPS)
    shift = (b - rm) * s + beta
    return w.T, s, shift


def _pad_mat(w, P):
    return jnp.zeros((P, P), jnp.float32).at[:w.shape[0], :w.shape[1]].set(w)


def _pad_vec(v, P):
    return jnp.zeros((P,), jnp.float32).at[:v.shape[0]].set(v)


def build_params(key, in_features, mid_size, latent_size, num_classes):
    cat_f = latent_size + num_classes + 2
    max_f = max(in_features, mid_size, latent_size, cat_f)
    P = 128 * ((max_f + 127) // 128)

    keys = jax.random.split(key, 12)

    # bn0 (eval mode -> pure affine)
    g0, b0, rm0, rv0 = _init_bn(keys[0], in_features)
    s0 = g0 / jnp.sqrt(rv0 + BN_EPS)
    t0 = b0 - rm0 * s0

    enc1 = _fold_fc_block(keys[1], in_features, mid_size)
    enc2 = _fold_fc_block(keys[2], mid_size, mid_size)
    enc3 = _fold_fc_block(keys[3], mid_size, mid_size)
    fcb1 = _fold_fc_block(keys[4], mid_size, latent_size)

    wm, bm = _init_linear(keys[5], latent_size, latent_size)
    wv, bv = _init_linear(keys[6], latent_size, latent_size)

    # fc_block2 takes cat([h(latent), onehot(sec, C), onehot(tb, 2)]).
    wt2, s2, t2 = _fold_fc_block(keys[7], cat_f, mid_size)
    wh = wt2[:latent_size]                      # rows hit by h
    wcond = wt2[latent_size:cat_f]              # rows hit by the two one-hots

    dec1 = _fold_fc_block(keys[8], mid_size, in_features)
    dec2 = _fold_fc_block(keys[9], in_features, in_features)
    dec3 = _fold_fc_block(keys[10], in_features, in_features)

    w_list = [enc1[0], enc2[0], enc3[0], fcb1[0], wm.T, wv.T,
              wh, wcond, dec1[0], dec2[0], dec3[0]]
    s_list = [s0, enc1[1], enc2[1], enc3[1], fcb1[1], s2,
              dec1[1], dec2[1], dec3[1]]
    t_list = [t0, enc1[2], enc2[2], enc3[2], fcb1[2], t2,
              dec1[2], dec2[2], dec3[2]]

    W = jnp.stack([_pad_mat(w, P) for w in w_list]).astype(jnp.bfloat16)
    S = jnp.stack([_pad_vec(v, P) for v in s_list])
    T = jnp.stack([_pad_vec(v, P) for v in t_list])
    BB = jnp.stack([_pad_vec(bm, P), _pad_vec(bv, P)])

    return {"W": W, "scale": S, "shift": T, "bneck_bias": BB}


# ----------------------------------------------------------------------------
# Main
# ----------------------------------------------------------------------------

if __name__ == "__main__":
    in_features, mid_size, latent_size, num_classes = 32, 64, 16, 4
    batch = 8

    key = jax.random.PRNGKey(0)
    k_param, k_x, k_sec, k_tb = jax.random.split(key, 4)

    params = build_params(k_param, in_features, mid_size, latent_size, num_classes)

    x = jax.random.normal(k_x, (batch, in_features), jnp.float32)
    section_type = jax.random.randint(k_sec, (batch,), 0, num_classes, jnp.int32)
    target_bool = jax.random.randint(k_tb, (batch,), 0, 2, jnp.int32)

    fwd = jax.jit(functools.partial(
        conditional_vae_forward,
        in_features=in_features,
        latent_size=latent_size,
        num_classes=num_classes))

    out = fwd(params, x, section_type, target_bool)
    jax.block_until_ready(out)

    assert out["reconstruction"].shape == (batch, in_features)
    assert out["reconst_error"].shape == (batch,)
    assert bool(jnp.all(jnp.isfinite(out["reconstruction"])))
    assert bool(jnp.all(jnp.isfinite(out["reconst_error"])))
    print("KERNEL_OK")
</pallas_src>

<mosaic_0001>
module attributes {stable_mosaic.version = 11 : i64} {
  func.func @fused_cvae_kernel(%arg0: i32, %arg1: memref<8x128xf32, #tpu.memory_space<vmem>>, %arg2: memref<8x2xi32, #tpu.memory_space<vmem>>, %arg3: memref<11x128x128xbf16, #tpu.memory_space<vmem>>, %arg4: memref<9x128xf32, #tpu.memory_space<vmem>>, %arg5: memref<9x128xf32, #tpu.memory_space<vmem>>, %arg6: memref<2x128xf32, #tpu.memory_space<vmem>>, %arg7: memref<8x128xf32, #tpu.memory_space<vmem>>, %arg8: memref<8x128xf32, #tpu.memory_space<vmem>>) attributes {dimension_semantics = [#tpu.dimension_semantics<parallel>], iteration_bounds = array<i64: 1>, scalar_prefetch = 0 : i64, scratch_operands = 0 : i64, tpu.core_type = #tpu.core_type<tc>, window_params = [{transform_indices = @transform_0, window_bounds = array<i64: 8, 128>}, {transform_indices = @transform_1, window_bounds = array<i64: 8, 2>}, {pipeline_mode = #tpu.pipeline_mode<synchronous>, transform_indices = @transform_2, window_bounds = array<i64: 11, 128, 128>}, {pipeline_mode = #tpu.pipeline_mode<synchronous>, transform_indices = @transform_3, window_bounds = array<i64: 9, 128>}, {pipeline_mode = #tpu.pipeline_mode<synchronous>, transform_indices = @transform_4, window_bounds = array<i64: 9, 128>}, {pipeline_mode = #tpu.pipeline_mode<synchronous>, transform_indices = @transform_5, window_bounds = array<i64: 2, 128>}, {transform_indices = @transform_6, window_bounds = array<i64: 8, 128>}, {transform_indices = @transform_7, window_bounds = array<i64: 8, 128>}]} {
    %c0 = arith.constant 0 : index
    %c0_0 = arith.constant 0 : index
    %0 = vector.load %arg1[%c0, %c0_0] : memref<8x128xf32, #tpu.memory_space<vmem>>, vector<8x128xf32>
    %c0_1 = arith.constant 0 : index
    %c0_2 = arith.constant 0 : index
    %1 = vector.load %arg4[%c0_1, %c0_2] : memref<9x128xf32, #tpu.memory_space<vmem>>, vector<1x128xf32>
    %2 = vector.shape_cast %1 : vector<1x128xf32> to vector<128xf32>
    %3 = vector.shape_cast %2 : vector<128xf32> to vector<1x128xf32>
    %4 = vector.broadcast %3 : vector<1x128xf32> to vector<8x128xf32>
    %5 = arith.mulf %0, %4 : vector<8x128xf32>
    %c0_3 = arith.constant 0 : index
    %c0_4 = arith.constant 0 : index
    %6 = vector.load %arg5[%c0_3, %c0_4] : memref<9x128xf32, #tpu.memory_space<vmem>>, vector<1x128xf32>
    %7 = vector.shape_cast %6 : vector<1x128xf32> to vector<128xf32>
    %8 = vector.shape_cast %7 : vector<128xf32> to vector<1x128xf32>
    %9 = vector.broadcast %8 : vector<1x128xf32> to vector<8x128xf32>
    %10 = arith.addf %5, %9 : vector<8x128xf32>
    %11 = arith.truncf %10 : vector<8x128xf32> to vector<8x128xbf16>
    %c0_5 = arith.constant 0 : index
    %c0_6 = arith.constant 0 : index
    %c0_7 = arith.constant 0 : index
    %12 = vector.load %arg3[%c0_5, %c0_6, %c0_7] : memref<11x128x128xbf16, #tpu.memory_space<vmem>>, vector<1x128x128xbf16>
    %13 = vector.shape_cast %12 : vector<1x128x128xbf16> to vector<128x128xbf16>
    %cst = arith.constant dense<0.000000e+00> : vector<8x128xf32>
    %14 = tpu.matmul %11, %13, %cst {dimension_numbers = #tpu.dot_dimension_numbers<[1], [0], [0], [1], [0, 0, 1, 1], [], []>} : vector<8x128xbf16>, vector<128x128xbf16>, vector<8x128xf32> -> vector<8x128xf32>
    %c1 = arith.constant 1 : index
    %c0_8 = arith.constant 0 : index
    %15 = vector.load %arg4[%c1, %c0_8] : memref<9x128xf32, #tpu.memory_space<vmem>>, vector<1x128xf32>
    %16 = vector.shape_cast %15 : vector<1x128xf32> to vector<128xf32>
    %17 = vector.shape_cast %16 : vector<128xf32> to vector<1x128xf32>
    %18 = vector.broadcast %17 : vector<1x128xf32> to vector<8x128xf32>
    %19 = arith.mulf %14, %18 : vector<8x128xf32>
    %c1_9 = arith.constant 1 : index
    %c0_10 = arith.constant 0 : index
    %20 = vector.load %arg5[%c1_9, %c0_10] : memref<9x128xf32, #tpu.memory_space<vmem>>, vector<1x128xf32>
    %21 = vector.shape_cast %20 : vector<1x128xf32> to vector<128xf32>
    %22 = vector.shape_cast %21 : vector<128xf32> to vector<1x128xf32>
    %23 = vector.broadcast %22 : vector<1x128xf32> to vector<8x128xf32>
    %24 = arith.addf %19, %23 : vector<8x128xf32>
    %cst_11 = arith.constant 0.000000e+00 : f32
    %25 = vector.broadcast %cst_11 : f32 to vector<8x128xf32>
    %26 = arith.maximumf %24, %25 : vector<8x128xf32>
    %27 = arith.truncf %26 : vector<8x128xf32> to vector<8x128xbf16>
    %c1_12 = arith.constant 1 : index
    %c0_13 = arith.constant 0 : index
    %c0_14 = arith.constant 0 : index
    %28 = vector.load %arg3[%c1_12, %c0_13, %c0_14] : memref<11x128x128xbf16, #tpu.memory_space<vmem>>, vector<1x128x128xbf16>
    %29 = vector.shape_cast %28 : vector<1x128x128xbf16> to vector<128x128xbf16>
    %cst_15 = arith.constant dense<0.000000e+00> : vector<8x128xf32>
    %30 = tpu.matmul %27, %29, %cst_15 {dimension_numbers = #tpu.dot_dimension_numbers<[1], [0], [0], [1], [0, 0, 1, 1], [], []>} : vector<8x128xbf16>, vector<128x128xbf16>, vector<8x128xf32> -> vector<8x128xf32>
    %c2 = arith.constant 2 : index
    %c0_16 = arith.constant 0 : index
    %31 = vector.load %arg4[%c2, %c0_16] : memref<9x128xf32, #tpu.memory_space<vmem>>, vector<1x128xf32>
    %32 = vector.shape_cast %31 : vector<1x128xf32> to vector<128xf32>
    %33 = vector.shape_cast %32 : vector<128xf32> to vector<1x128xf32>
    %34 = vector.broadcast %33 : vector<1x128xf32> to vector<8x128xf32>
    %35 = arith.mulf %30, %34 : vector<8x128xf32>
    %c2_17 = arith.constant 2 : index
    %c0_18 = arith.constant 0 : index
    %36 = vector.load %arg5[%c2_17, %c0_18] : memref<9x128xf32, #tpu.memory_space<vmem>>, vector<1x128xf32>
    %37 = vector.shape_cast %36 : vector<1x128xf32> to vector<128xf32>
    %38 = vector.shape_cast %37 : vector<128xf32> to vector<1x128xf32>
    %39 = vector.broadcast %38 : vector<1x128xf32> to vector<8x128xf32>
    %40 = arith.addf %35, %39 : vector<8x128xf32>
    %cst_19 = arith.constant 0.000000e+00 : f32
    %41 = vector.broadcast %cst_19 : f32 to vector<8x128xf32>
    %42 = arith.maximumf %40, %41 : vector<8x128xf32>
    %43 = arith.truncf %42 : vector<8x128xf32> to vector<8x128xbf16>
    %c2_20 = arith.constant 2 : index
    %c0_21 = arith.constant 0 : index
    %c0_22 = arith.constant 0 : index
    %44 = vector.load %arg3[%c2_20, %c0_21, %c0_22] : memref<11x128x128xbf16, #tpu.memory_space<vmem>>, vector<1x128x128xbf16>
    %45 = vector.shape_cast %44 : vector<1x128x128xbf16> to vector<128x128xbf16>
    %cst_23 = arith.constant dense<0.000000e+00> : vector<8x128xf32>
    %46 = tpu.matmul %43, %45, %cst_23 {dimension_numbers = #tpu.dot_dimension_numbers<[1], [0], [0], [1], [0, 0, 1, 1], [], []>} : vector<8x128xbf16>, vector<128x128xbf16>, vector<8x128xf32> -> vector<8x128xf32>
    %c3 = arith.constant 3 : index
    %c0_24 = arith.constant 0 : index
    %47 = vector.load %arg4[%c3, %c0_24] : memref<9x128xf32, #tpu.memory_space<vmem>>, vector<1x128xf32>
    %48 = vector.shape_cast %47 : vector<1x128xf32> to vector<128xf32>
    %49 = vector.shape_cast %48 : vector<128xf32> to vector<1x128xf32>
    %50 = vector.broadcast %49 : vector<1x128xf32> to vector<8x128xf32>
    %51 = arith.mulf %46, %50 : vector<8x128xf32>
    %c3_25 = arith.constant 3 : index
    %c0_26 = arith.constant 0 : index
    %52 = vector.load %arg5[%c3_25, %c0_26] : memref<9x128xf32, #tpu.memory_space<vmem>>, vector<1x128xf32>
    %53 = vector.shape_cast %52 : vector<1x128xf32> to vector<128xf32>
    %54 = vector.shape_cast %53 : vector<128xf32> to vector<1x128xf32>
    %55 = vector.broadcast %54 : vector<1x128xf32> to vector<8x128xf32>
    %56 = arith.addf %51, %55 : vector<8x128xf32>
    %cst_27 = arith.constant 0.000000e+00 : f32
    %57 = vector.broadcast %cst_27 : f32 to vector<8x128xf32>
    %58 = arith.maximumf %56, %57 : vector<8x128xf32>
    %59 = arith.truncf %58 : vector<8x128xf32> to vector<8x128xbf16>
    %c3_28 = arith.constant 3 : index
    %c0_29 = arith.constant 0 : index
    %c0_30 = arith.constant 0 : index
    %60 = vector.load %arg3[%c3_28, %c0_29, %c0_30] : memref<11x128x128xbf16, #tpu.memory_space<vmem>>, vector<1x128x128xbf16>
    %61 = vector.shape_cast %60 : vector<1x128x128xbf16> to vector<128x128xbf16>
    %cst_31 = arith.constant dense<0.000000e+00> : vector<8x128xf32>
    %62 = tpu.matmul %59, %61, %cst_31 {dimension_numbers = #tpu.dot_dimension_numbers<[1], [0], [0], [1], [0, 0, 1, 1], [], []>} : vector<8x128xbf16>, vector<128x128xbf16>, vector<8x128xf32> -> vector<8x128xf32>
    %c4 = arith.constant 4 : index
    %c0_32 = arith.constant 0 : index
    %63 = vector.load %arg4[%c4, %c0_32] : memref<9x128xf32, #tpu.memory_space<vmem>>, vector<1x128xf32>
    %64 = vector.shape_cast %63 : vector<1x128xf32> to vector<128xf32>
    %65 = vector.shape_cast %64 : vector<128xf32> to vector<1x128xf32>
    %66 = vector.broadcast %65 : vector<1x128xf32> to vector<8x128xf32>
    %67 = arith.mulf %62, %66 : vector<8x128xf32>
    %c4_33 = arith.constant 4 : index
    %c0_34 = arith.constant 0 : index
    %68 = vector.load %arg5[%c4_33, %c0_34] : memref<9x128xf32, #tpu.memory_space<vmem>>, vector<1x128xf32>
    %69 = vector.shape_cast %68 : vector<1x128xf32> to vector<128xf32>
    %70 = vector.shape_cast %69 : vector<128xf32> to vector<1x128xf32>
    %71 = vector.broadcast %70 : vector<1x128xf32> to vector<8x128xf32>
    %72 = arith.addf %67, %71 : vector<8x128xf32>
    %cst_35 = arith.constant 0.000000e+00 : f32
    %73 = vector.broadcast %cst_35 : f32 to vector<8x128xf32>
    %74 = arith.maximumf %72, %73 : vector<8x128xf32>
    %75 = arith.truncf %74 : vector<8x128xf32> to vector<8x128xbf16>
    %c4_36 = arith.constant 4 : index
    %c0_37 = arith.constant 0 : index
    %c0_38 = arith.constant 0 : index
    %76 = vector.load %arg3[%c4_36, %c0_37, %c0_38] : memref<11x128x128xbf16, #tpu.memory_space<vmem>>, vector<1x128x128xbf16>
    %77 = vector.shape_cast %76 : vector<1x128x128xbf16> to vector<128x128xbf16>
    %cst_39 = arith.constant dense<0.000000e+00> : vector<8x128xf32>
    %78 = tpu.matmul %75, %77, %cst_39 {dimension_numbers = #tpu.dot_dimension_numbers<[1], [0], [0], [1], [0, 0, 1, 1], [], []>} : vector<8x128xbf16>, vector<128x128xbf16>, vector<8x128xf32> -> vector<8x128xf32>
    %c0_40 = arith.constant 0 : index
    %c0_41 = arith.constant 0 : index
    %79 = vector.load %arg6[%c0_40, %c0_41] : memref<2x128xf32, #tpu.memory_space<vmem>>, vector<1x128xf32>
    %80 = vector.shape_cast %79 : vector<1x128xf32> to vector<128xf32>
    %81 = vector.shape_cast %80 : vector<128xf32> to vector<1x128xf32>
    %82 = vector.broadcast %81 : vector<1x128xf32> to vector<8x128xf32>
    %83 = arith.addf %78, %82 : vector<8x128xf32>
    %c5 = arith.constant 5 : index
    %c0_42 = arith.constant 0 : index
    %c0_43 = arith.constant 0 : index
    %84 = vector.load %arg3[%c5, %c0_42, %c0_43] : memref<11x128x128xbf16, #tpu.memory_space<vmem>>, vector<1x128x128xbf16>
    %85 = vector.shape_cast %84 : vector<1x128x128xbf16> to vector<128x128xbf16>
    %cst_44 = arith.constant dense<0.000000e+00> : vector<8x128xf32>
    %86 = tpu.matmul %75, %85, %cst_44 {dimension_numbers = #tpu.dot_dimension_numbers<[1], [0], [0], [1], [0, 0, 1, 1], [], []>} : vector<8x128xbf16>, vector<128x128xbf16>, vector<8x128xf32> -> vector<8x128xf32>
    %c1_45 = arith.constant 1 : index
    %c0_46 = arith.constant 0 : index
    %87 = vector.load %arg6[%c1_45, %c0_46] : memref<2x128xf32, #tpu.memory_space<vmem>>, vector<1x128xf32>
    %88 = vector.shape_cast %87 : vector<1x128xf32> to vector<128xf32>
    %89 = vector.shape_cast %88 : vector<128xf32> to vector<1x128xf32>
    %90 = vector.broadcast %89 : vector<1x128xf32> to vector<8x128xf32>
    %91 = arith.addf %86, %90 : vector<8x128xf32>
    %92 = tpu.iota {dimensions = array<i32: 1>} : vector<8x128xi32>
    %cst_47 = arith.constant 1.000000e+00 : f32
    %93 = vector.broadcast %cst_47 : f32 to vector<8x128xf32>
    %94 = arith.addf %93, %91 : vector<8x128xf32>
    %95 = arith.mulf %83, %83 : vector<8x128xf32>
    %96 = arith.subf %94, %95 : vector<8x128xf32>
    %cst_48 = arith.constant 9.99999996E-13 : f32
    %97 = vector.broadcast %cst_48 : f32 to vector<8x128xf32>
    %98 = arith.addf %91, %97 : vector<8x128xf32>
    %99 = math.exp %98 : vector<8x128xf32>
    %100 = arith.subf %96, %99 : vector<8x128xf32>
    %c16_i32 = arith.constant 16 : i32
    %101 = vector.broadcast %c16_i32 : i32 to vector<8x128xi32>
    %102 = arith.cmpi slt, %92, %101 : vector<8x128xi32>
    %cst_49 = arith.constant 0.000000e+00 : f32
    %103 = vector.broadcast %cst_49 : f32 to vector<8x128xf32>
    %104 = arith.select %102, %100, %103 : vector<8x128xi1>, vector<8x128xf32>
    %cst_50 = arith.constant dense<0.000000e+00> : vector<8xf32>
    %105 = vector.multi_reduction <add>, %104, %cst_50 [1] : vector<8x128xf32> to vector<8xf32>
    %106 = vector.shape_cast %105 : vector<8xf32> to vector<8x1xf32>
    %cst_51 = arith.constant -5.000000e-01 : f32
    %107 = vector.broadcast %cst_51 : f32 to vector<8x1xf32>
    %108 = arith.mulf %107, %106 : vector<8x1xf32>
    %c0_52 = arith.constant 0 : index
    %c0_53 = arith.constant 0 : index
    %109 = vector.load %arg2[%c0_52, %c0_53] : memref<8x2xi32, #tpu.memory_space<vmem>>, vector<8x2xi32>
    %110 = vector.extract_strided_slice %109 {offsets = [0, 0], sizes = [8, 1], strides = [1, 1]} : vector<8x2xi32> to vector<8x1xi32>
    %111 = vector.extract_strided_slice %109 {offsets = [0, 1], sizes = [8, 1], strides = [1, 1]} : vector<8x2xi32> to vector<8x1xi32>
    %112 = vector.broadcast %110 : vector<8x1xi32> to vector<8x128xi32>
    %113 = arith.cmpi eq, %92, %112 : vector<8x128xi32>
    %cst_54 = arith.constant 1.000000e+00 : f32
    %cst_55 = arith.constant 0.000000e+00 : f32
    %114 = vector.broadcast %cst_54 : f32 to vector<8x128xf32>
    %115 = vector.broadcast %cst_55 : f32 to vector<8x128xf32>
    %116 = arith.select %113, %114, %115 : vector<8x128xi1>, vector<8x128xf32>
    %117 = vector.broadcast %111 : vector<8x1xi32> to vector<8x128xi32>
    %118 = arith.cmpi eq, %92, %117 : vector<8x128xi32>
    %cst_56 = arith.constant 1.000000e+00 : f32
    %cst_57 = arith.constant 0.000000e+00 : f32
    %119 = vector.broadcast %cst_56 : f32 to vector<8x128xf32>
    %120 = vector.broadcast %cst_57 : f32 to vector<8x128xf32>
    %121 = arith.select %118, %119, %120 : vector<8x128xi1>, vector<8x128xf32>
    %122 = arith.addf %116, %121 : vector<8x128xf32>
    %123 = arith.truncf %122 : vector<8x128xf32> to vector<8x128xbf16>
    %c6 = arith.constant 6 : index
    %c0_58 = arith.constant 0 : index
    %c0_59 = arith.constant 0 : index
    %124 = vector.load %arg3[%c6, %c0_58, %c0_59] : memref<11x128x128xbf16, #tpu.memory_space<vmem>>, vector<1x128x128xbf16>
    %125 = vector.shape_cast %124 : vector<1x128x128xbf16> to vector<128x128xbf16>
    %cst_60 = arith.constant dense<0.000000e+00> : vector<8x128xf32>
    %126 = tpu.matmul %75, %125, %cst_60 {dimension_numbers = #tpu.dot_dimension_numbers<[1], [0], [0], [1], [0, 0, 1, 1], [], []>} : vector<8x128xbf16>, vector<128x128xbf16>, vector<8x128xf32> -> vector<8x128xf32>
    %c7 = arith.constant 7 : index
    %c0_61 = arith.constant 0 : index
    %c0_62 = arith.constant 0 : index
    %127 = vector.load %arg3[%c7, %c0_61, %c0_62] : memref<11x128x128xbf16, #tpu.memory_space<vmem>>, vector<1x128x128xbf16>
    %128 = vector.shape_cast %127 : vector<1x128x128xbf16> to vector<128x128xbf16>
    %cst_63 = arith.constant dense<0.000000e+00> : vector<8x128xf32>
    %129 = tpu.matmul %123, %128, %cst_63 {dimension_numbers = #tpu.dot_dimension_numbers<[1], [0], [0], [1], [0, 0, 1, 1], [], []>} : vector<8x128xbf16>, vector<128x128xbf16>, vector<8x128xf32> -> vector<8x128xf32>
    %130 = arith.addf %126, %129 : vector<8x128xf32>
    %c5_64 = arith.constant 5 : index
    %c0_65 = arith.constant 0 : index
    %131 = vector.load %arg4[%c5_64, %c0_65] : memref<9x128xf32, #tpu.memory_space<vmem>>, vector<1x128xf32>
    %132 = vector.shape_cast %131 : vector<1x128xf32> to vector<128xf32>
    %133 = vector.shape_cast %132 : vector<128xf32> to vector<1x128xf32>
    %134 = vector.broadcast %133 : vector<1x128xf32> to vector<8x128xf32>
    %135 = arith.mulf %130, %134 : vector<8x128xf32>
    %c5_66 = arith.constant 5 : index
    %c0_67 = arith.constant 0 : index
    %136 = vector.load %arg5[%c5_66, %c0_67] : memref<9x128xf32, #tpu.memory_space<vmem>>, vector<1x128xf32>
    %137 = vector.shape_cast %136 : vector<1x128xf32> to vector<128xf32>
    %138 = vector.shape_cast %137 : vector<128xf32> to vector<1x128xf32>
    %139 = vector.broadcast %138 : vector<1x128xf32> to vector<8x128xf32>
    %140 = arith.addf %135, %139 : vector<8x128xf32>
    %cst_68 = arith.constant 0.000000e+00 : f32
    %141 = vector.broadcast %cst_68 : f32 to vector<8x128xf32>
    %142 = arith.maximumf %140, %141 : vector<8x128xf32>
    %143 = arith.truncf %142 : vector<8x128xf32> to vector<8x128xbf16>
    %c8 = arith.constant 8 : index
    %c0_69 = arith.constant 0 : index
    %c0_70 = arith.constant 0 : index
    %144 = vector.load %arg3[%c8, %c0_69, %c0_70] : memref<11x128x128xbf16, #tpu.memory_space<vmem>>, vector<1x128x128xbf16>
    %145 = vector.shape_cast %144 : vector<1x128x128xbf16> to vector<128x128xbf16>
    %cst_71 = arith.constant dense<0.000000e+00> : vector<8x128xf32>
    %146 = tpu.matmul %143, %145, %cst_71 {dimension_numbers = #tpu.dot_dimension_numbers<[1], [0], [0], [1], [0, 0, 1, 1], [], []>} : vector<8x128xbf16>, vector<128x128xbf16>, vector<8x128xf32> -> vector<8x128xf32>
    %c6_72 = arith.constant 6 : index
    %c0_73 = arith.constant 0 : index
    %147 = vector.load %arg4[%c6_72, %c0_73] : memref<9x128xf32, #tpu.memory_space<vmem>>, vector<1x128xf32>
    %148 = vector.shape_cast %147 : vector<1x128xf32> to vector<128xf32>
    %149 = vector.shape_cast %148 : vector<128xf32> to vector<1x128xf32>
    %150 = vector.broadcast %149 : vector<1x128xf32> to vector<8x128xf32>
    %151 = arith.mulf %146, %150 : vector<8x128xf32>
    %c6_74 = arith.constant 6 : index
    %c0_75 = arith.constant 0 : index
    %152 = vector.load %arg5[%c6_74, %c0_75] : memref<9x128xf32, #tpu.memory_space<vmem>>, vector<1x128xf32>
    %153 = vector.shape_cast %152 : vector<1x128xf32> to vector<128xf32>
    %154 = vector.shape_cast %153 : vector<128xf32> to vector<1x128xf32>
    %155 = vector.broadcast %154 : vector<1x128xf32> to vector<8x128xf32>
    %156 = arith.addf %151, %155 : vector<8x128xf32>
    %cst_76 = arith.constant 0.000000e+00 : f32
    %157 = vector.broadcast %cst_76 : f32 to vector<8x128xf32>
    %158 = arith.maximumf %156, %157 : vector<8x128xf32>
    %159 = arith.truncf %158 : vector<8x128xf32> to vector<8x128xbf16>
    %c9 = arith.constant 9 : index
    %c0_77 = arith.constant 0 : index
    %c0_78 = arith.constant 0 : index
    %160 = vector.load %arg3[%c9, %c0_77, %c0_78] : memref<11x128x128xbf16, #tpu.memory_space<vmem>>, vector<1x128x128xbf16>
    %161 = vector.shape_cast %160 : vector<1x128x128xbf16> to vector<128x128xbf16>
    %cst_79 = arith.constant dense<0.000000e+00> : vector<8x128xf32>
    %162 = tpu.matmul %159, %161, %cst_79 {dimension_numbers = #tpu.dot_dimension_numbers<[1], [0], [0], [1], [0, 0, 1, 1], [], []>} : vector<8x128xbf16>, vector<128x128xbf16>, vector<8x128xf32> -> vector<8x128xf32>
    %c7_80 = arith.constant 7 : index
    %c0_81 = arith.constant 0 : index
    %163 = vector.load %arg4[%c7_80, %c0_81] : memref<9x128xf32, #tpu.memory_space<vmem>>, vector<1x128xf32>
    %164 = vector.shape_cast %163 : vector<1x128xf32> to vector<128xf32>
    %165 = vector.shape_cast %164 : vector<128xf32> to vector<1x128xf32>
    %166 = vector.broadcast %165 : vector<1x128xf32> to vector<8x128xf32>
    %167 = arith.mulf %162, %166 : vector<8x128xf32>
    %c7_82 = arith.constant 7 : index
    %c0_83 = arith.constant 0 : index
    %168 = vector.load %arg5[%c7_82, %c0_83] : memref<9x128xf32, #tpu.memory_space<vmem>>, vector<1x128xf32>
    %169 = vector.shape_cast %168 : vector<1x128xf32> to vector<128xf32>
    %170 = vector.shape_cast %169 : vector<128xf32> to vector<1x128xf32>
    %171 = vector.broadcast %170 : vector<1x128xf32> to vector<8x128xf32>
    %172 = arith.addf %167, %171 : vector<8x128xf32>
    %cst_84 = arith.constant 0.000000e+00 : f32
    %173 = vector.broadcast %cst_84 : f32 to vector<8x128xf32>
    %174 = arith.maximumf %172, %173 : vector<8x128xf32>
    %175 = arith.truncf %174 : vector<8x128xf32> to vector<8x128xbf16>
    %c10 = arith.constant 10 : index
    %c0_85 = arith.constant 0 : index
    %c0_86 = arith.constant 0 : index
    %176 = vector.load %arg3[%c10, %c0_85, %c0_86] : memref<11x128x128xbf16, #tpu.memory_space<vmem>>, vector<1x128x128xbf16>
    %177 = vector.shape_cast %176 : vector<1x128x128xbf16> to vector<128x128xbf16>
    %cst_87 = arith.constant dense<0.000000e+00> : vector<8x128xf32>
    %178 = tpu.matmul %175, %177, %cst_87 {dimension_numbers = #tpu.dot_dimension_numbers<[1], [0], [0], [1], [0, 0, 1, 1], [], []>} : vector<8x128xbf16>, vector<128x128xbf16>, vector<8x128xf32> -> vector<8x128xf32>
    %c8_88 = arith.constant 8 : index
    %c0_89 = arith.constant 0 : index
    %179 = vector.load %arg4[%c8_88, %c0_89] : memref<9x128xf32, #tpu.memory_space<vmem>>, vector<1x128xf32>
    %180 = vector.shape_cast %179 : vector<1x128xf32> to vector<128xf32>
    %181 = vector.shape_cast %180 : vector<128xf32> to vector<1x128xf32>
    %182 = vector.broadcast %181 : vector<1x128xf32> to vector<8x128xf32>
    %183 = arith.mulf %178, %182 : vector<8x128xf32>
    %c8_90 = arith.constant 8 : index
    %c0_91 = arith.constant 0 : index
    %184 = vector.load %arg5[%c8_90, %c0_91] : memref<9x128xf32, #tpu.memory_space<vmem>>, vector<1x128xf32>
    %185 = vector.shape_cast %184 : vector<1x128xf32> to vector<128xf32>
    %186 = vector.shape_cast %185 : vector<128xf32> to vector<1x128xf32>
    %187 = vector.broadcast %186 : vector<1x128xf32> to vector<8x128xf32>
    %188 = arith.addf %183, %187 : vector<8x128xf32>
    %cst_92 = arith.constant 0.000000e+00 : f32
    %189 = vector.broadcast %cst_92 : f32 to vector<8x128xf32>
    %190 = arith.maximumf %188, %189 : vector<8x128xf32>
    %191 = arith.subf %190, %10 : vector<8x128xf32>
    %192 = arith.mulf %191, %191 : vector<8x128xf32>
    %cst_93 = arith.constant dense<0.000000e+00> : vector<8xf32>
    %193 = vector.multi_reduction <add>, %192, %cst_93 [1] : vector<8x128xf32> to vector<8xf32>
    %194 = vector.shape_cast %193 : vector<8xf32> to vector<8x1xf32>
    %cst_94 = arith.constant 3.125000e-02 : f32
    %195 = vector.broadcast %cst_94 : f32 to vector<8x1xf32>
    %196 = arith.mulf %194, %195 : vector<8x1xf32>
    %197 = arith.addf %196, %108 : vector<8x1xf32>
    %c0_95 = arith.constant 0 : index
    %c0_96 = arith.constant 0 : index
    %198 = vector.load %arg7[%c0_95, %c0_96] : memref<8x128xf32, #tpu.memory_space<vmem>>, vector<8x128xf32>
    tpu.vector_store %arg7[%c0_95, %c0_96], %190 {strides = array<i32>} : memref<8x128xf32, #tpu.memory_space<vmem>>, vector<8x128xf32>,
    %199 = vector.shape_cast %197 : vector<8x1xf32> to vector<8x1xf32>
    %200 = vector.broadcast %199 : vector<8x1xf32> to vector<8x128xf32>
    %c0_97 = arith.constant 0 : index
    %c0_98 = arith.constant 0 : index
    %201 = vector.load %arg8[%c0_97, %c0_98] : memref<8x128xf32, #tpu.memory_space<vmem>>, vector<8x128xf32>
    tpu.vector_store %arg8[%c0_97, %c0_98], %200 {strides = array<i32>} : memref<8x128xf32, #tpu.memory_space<vmem>>, vector<8x128xf32>,
    return
  }
  func.func @transform_0(%arg0: i32) -> (i32, i32) {
    %c0_i32 = arith.constant 0 : i32
    %c0_i32_0 = arith.constant 0 : i32
    return %arg0, %c0_i32 : i32, i32
  }
  func.func @transform_1(%arg0: i32) -> (i32, i32) {
    %c0_i32 = arith.constant 0 : i32
    %c0_i32_0 = arith.constant 0 : i32
    return %arg0, %c0_i32 : i32, i32
  }
  func.func @transform_2(%arg0: i32) -> (i32, i32, i32) {
    %c0_i32 = arith.constant 0 : i32
    %c0_i32_0 = arith.constant 0 : i32
    %c0_i32_1 = arith.constant 0 : i32
    %c0_i32_2 = arith.constant 0 : i32
    return %c0_i32, %c0_i32_0, %c0_i32_1 : i32, i32, i32
  }
  func.func @transform_3(%arg0: i32) -> (i32, i32) {
    %c0_i32 = arith.constant 0 : i32
    %c0_i32_0 = arith.constant 0 : i32
    %c0_i32_1 = arith.constant 0 : i32
    return %c0_i32, %c0_i32_0 : i32, i32
  }
  func.func @transform_4(%arg0: i32) -> (i32, i32) {
    %c0_i32 = arith.constant 0 : i32
    %c0_i32_0 = arith.constant 0 : i32
    %c0_i32_1 = arith.constant 0 : i32
    return %c0_i32, %c0_i32_0 : i32, i32
  }
  func.func @transform_5(%arg0: i32) -> (i32, i32) {
    %c0_i32 = arith.constant 0 : i32
    %c0_i32_0 = arith.constant 0 : i32
    %c0_i32_1 = arith.constant 0 : i32
    return %c0_i32, %c0_i32_0 : i32, i32
  }
  func.func @transform_6(%arg0: i32) -> (i32, i32) {
    %c0_i32 = arith.constant 0 : i32
    %c0_i32_0 = arith.constant 0 : i32
    return %arg0, %c0_i32 : i32, i32
  }
  func.func @transform_7(%arg0: i32) -> (i32, i32) {
    %c0_i32 = arith.constant 0 : i32
    %c0_i32_0 = arith.constant 0 : i32
    return %arg0, %c0_i32 : i32, i32
  }
}

</mosaic_0001>

<bundles_post_ra>
// kernel: conditional_vae_forward.1
= control target key start
LH: loop header
LB: loop body
LE: loop exit
PB: predicated region body
PF: predicated region fallthrough
CT: control target
= control target key end

     0   :  { %13 = vsyncpa [#allocation3], 0  ;;  %s1685_s0 = inlined_call_operand.vmem [shape: f32[8,128], index: 0, kind: input, shape index: {}]   ;;  %s1686_s1 = inlined_call_operand.vmem [shape: s32[8,2], index: 1, kind: input, shape index: {}]   ;;  %s1687_s2 = inlined_call_operand.hbm [shape: bf16[11,128,128], index: 2, kind: input, shape index: {}]   ;;  %s1688_s3 = inlined_call_operand.vmem [shape: f32[9,128], index: 3, kind: input, shape index: {}]   ;;  %s1689_s4 = inlined_call_operand.vmem [shape: f32[9,128], index: 4, kind: input, shape index: {}]   ;;  %s1690_s5 = inlined_call_operand.vmem [shape: f32[2,128], index: 5, kind: input, shape index: {}]   ;;  %s1691_s6 = inlined_call_operand.hbm [shape: f32[8,128], index: 6, kind: output, shape index: {0}]   ;;  %s1692_s7 = inlined_call_operand.vmem [shape: f32[8,128], index: 7, kind: output, shape index: {1}]  }
   0x1   :  { %14 = vsyncpa [#allocation4], 0  ;;  %s23_s26 = sshll.u32 %s1687_s2, 4  ;;  %s1553_s27 = smov [#allocation2]   ;;  %s24_s26 = int_to_ptr.hbm [resolvable:$true] %s23_s26 }
   0x2   :  { %s25_s28 = sshll.u32 %s1553_s27, 4  ;;  %s1554_s29 = smov 64   ;;  %s26_s28 = int_to_ptr.vmem [resolvable:$true] %s25_s28 }
   0x3   :  { %s1555_s30 = smov 4  }
   0x4   :  { %31 = dma.hbm_to_vmem [thread:$0]  %s24_s26, 11264, %s26_s28, [#allocation3], %s1554_s29, %s1554_s29, %s1555_s30  }
   0x5   :  { %1549 = dma.done.wait [#allocation3], 11264  }
   0x6   :  { %1550 = vsyncadd [#allocation3], 4294956032  ;;  %v1389_v0 = vld [vmem:[#allocation2 + $0x38] sm:$0xff]  ;;  %v1388_v1 = vld [vmem:[#allocation2 + $0x30] sm:$0xff]  ;;  %v1556_v53 = vmov 0   ;;  %v1557_v57 = vmov 1  }
   0x7   :  { %114 = vmatpush.bf16.msra.mxu0 %v1389_v0  ;;  %v1397_v2 = vld [vmem:[#allocation2 + $0x78] sm:$0xff]  ;;  %v1387_v3 = vld [vmem:[#allocation2 + $0x28] sm:$0xff]  ;;  %v1396_v4 = vld [vmem:[#allocation2 + $0x70] sm:$0xff]  ;;  %1477 = vset.pattern.permute.xlu0 %v1556_v53  ;;  %s1559_s23 = smov [#allocation5]   ;;  %s1016_s26 = sshll.u32 %s1691_s6, 4  ;;  %s1017_s26 = int_to_ptr.hbm [resolvable:$true] %s1016_s26 }
   0x8   :  { %200 = vmatpush.bf16.msra.mxu1 %v1397_v2  ;;  %v1386_v5 = vld [vmem:[#allocation2 + $0x20] sm:$0xff]  ;;  %v1395_v6 = vld [vmem:[#allocation2 + $0x68] sm:$0xff]  ;;  %v1385_v7 = vld [vmem:[#allocation2 + $0x18] sm:$0xff] }
   0x9   :  { %v1394_v8 = vld [vmem:[#allocation2 + $0x60] sm:$0xff]  ;;  %v1384_v10 = vld [vmem:[#allocation2 + $0x10] sm:$0xff]  ;;  %v1393_v12 = vld [vmem:[#allocation2 + $0x58] sm:$0xff] }
   0xa   :  { %v1479_v9 = vld [vmem:[%s1688_s3] ss:$0 sm:$0xff]  ;;  %v1383_v15 = vld [vmem:[#allocation2 + $0x8] sm:$0xff]  ;;  %v1392_v16 = vld [vmem:[#allocation2 + $0x50] sm:$0xff] }
   0xb   :  { %115 = vmatpush.bf16.msra.mxu0 %v1388_v1  ;;  %v42_v11 = vld [vmem:[%s1685_s0] sm:$0xff]  ;;  %v1391_v20 = vld [vmem:[#allocation2 + $0x48] sm:$0xff]  ;;  %v1405_v22 = vld [vmem:[#allocation2 + $0xb8] sm:$0xff] }
   0xc   :  { %201 = vmatpush.bf16.msra.mxu1 %v1396_v4  ;;  %v45_v13 = vmul.f32 %v1479_v9, %v42_v11  ;;  %v1480_v14 = vld [vmem:[%s1689_s4] ss:$0 sm:$0xff]  ;;  %286 = vmatpush.bf16.msra.mxu2 %v1405_v22  ;;  %v1404_v23 = vld [vmem:[#allocation2 + $0xb0] sm:$0xff]  ;;  %v1403_v24 = vld [vmem:[#allocation2 + $0xa8] sm:$0xff] }
   0xd   :  { %v1382_v18 = vld [vmem:[#allocation2] sm:$0xff]  ;;  %v1401_v26 = vld [vmem:[#allocation2 + $0x98] sm:$0xff]  ;;  %v1400_v27 = vld [vmem:[#allocation2 + $0x90] sm:$0xff] }
   0xe   :  { %v1612_v17 = vadd.f32 %v1480_v14, %v45_v13  ;;  %v1390_v21 = vld [vmem:[#allocation2 + $0x40] sm:$0xff]  ;;  %v1399_v36 = vld [vmem:[#allocation2 + $0x88] sm:$0xff]  ;;  %v1413_v38 = vld [vmem:[#allocation2 + $0xf8] sm:$0xff] }
   0xf   :  { %116 = vmatpush.bf16.msra.mxu0 %v1387_v3  ;;  %v1402_v25 = vld [vmem:[#allocation2 + $0xa0] sm:$0xff]  ;;  %372 = vmatpush.bf16.msra.mxu3 %v1413_v38  ;;  %v1412_v39 = vld [vmem:[#allocation2 + $0xf0] sm:$0xff]  ;;  %v1411_v40 = vld [vmem:[#allocation2 + $0xe8] sm:$0xff] }
  0x10   :  { %202 = vmatpush.bf16.msra.mxu1 %v1395_v6  ;;  %v49_v19 = vpack.c.bf16 %v1612_v17, %v1612_v17  ;;  %287 = vmatpush.bf16.msra.mxu2 %v1404_v23  ;;  %v1481_v28 = vld [vmem:[%s1688_s3 + $0x1] ss:$0 sm:$0xff]  ;;  %v1409_v42 = vld [vmem:[#allocation2 + $0xd8] sm:$0xff]  ;;  %v1408_v43 = vld [vmem:[#allocation2 + $0xd0] sm:$0xff] }
  0x11   :  { %v1482_v29 = vld [vmem:[%s1689_s4 + $0x1] ss:$0 sm:$0xff]  ;;  %v1483_v44 = vld [vmem:[%s1688_s3 + $0x2] ss:$0 sm:$0xff]  ;;  %v1407_v52 = vld [vmem:[#allocation2 + $0xc8] sm:$0xff] }
  0x12   :  { %v1398_v37 = vld [vmem:[#allocation2 + $0x80] sm:$0xff]  ;;  %v1445_v56 = vld [vmem:[#allocation2 + $0x1f8] sm:$0xff]  ;;  %v1444_v58 = vld [vmem:[#allocation2 + $0x1f0] sm:$0xff] }
  0x13   :  { %117 = vmatpush.bf16.msra.mxu0 %v1386_v5  ;;  %373 = vmatpush.bf16.msra.mxu3 %v1412_v39  ;;  %v1410_v41 = vld [vmem:[#allocation2 + $0xe0] sm:$0xff]  ;;  %v1443_v59 = vld [vmem:[#allocation2 + $0x1e8] sm:$0xff]  ;;  %v1441_v5 = vld [vmem:[#allocation2 + $0x1d8] sm:$0xff] }
  0x14   :  { %203 = vmatpush.bf16.msra.mxu1 %v1394_v8  ;;  %288 = vmatpush.bf16.msra.mxu2 %v1403_v24  ;;  %v1484_v45 = vld [vmem:[%s1689_s4 + $0x2] ss:$0 sm:$0xff]  ;;  %v1485_v61 = vld [vmem:[%s1688_s3 + $0x3] ss:$0 sm:$0xff]  ;;  %v1421_v6 = vld [vmem:[#allocation2 + $0x138] sm:$0xff] }
  0x15   :  { %v567_v54 = vld [vmem:[%s1686_s1] sm:$0xff]  ;;  %v1437_v8 = vld [vmem:[#allocation2 + $0x1b8] sm:$0xff]  ;;  %v1440_v9 = vld [vmem:[#allocation2 + $0x1d0] sm:$0xff]  ;;  %s1014_s1 = sshll.u32 %s1559_s23, 4  ;;  %s1015_s1 = int_to_ptr.vmem [resolvable:$true] %s1014_s1 }
  0x16   :  { %569 = vperm.xlu0 %1477, %v567_v54   ;;  %v1406_v55 = vld [vmem:[#allocation2 + $0xc0] sm:$0xff]  ;;  %v1428_v11 = vld [vmem:[#allocation2 + $0x170] sm:$0xff]  ;;  %v1439_v13 = vld [vmem:[#allocation2 + $0x1c8] sm:$0xff] }
  0x17   :  { %118 = vmatpush.bf16.msra.mxu0 %v1385_v7  ;;  %374 = vmatpush.bf16.msra.mxu3 %v1411_v40  ;;  %v1442_v60 = vld [vmem:[#allocation2 + $0x1e0] sm:$0xff]  ;;  %v1429_v7 = vld [vmem:[#allocation2 + $0x178] sm:$0xff]  ;;  %v1419_v14 = vld [vmem:[#allocation2 + $0x128] sm:$0xff] }
  0x18   :  { %204 = vmatpush.bf16.msra.mxu1 %v1393_v12  ;;  %289 = vmatpush.bf16.msra.mxu2 %v1402_v25  ;;  %v1486_v62 = vld [vmem:[%s1689_s4 + $0x3] ss:$0 sm:$0xff]  ;;  %v1436_v12 = vld [vmem:[#allocation2 + $0x1b0] sm:$0xff]  ;;  %v1417_v22 = vld [vmem:[#allocation2 + $0x118] sm:$0xff] }
  0x19   :  { %v1425_v23 = vld [vmem:[#allocation2 + $0x158] sm:$0xff]  ;;  %v1416_v25 = vld [vmem:[#allocation2 + $0x110] sm:$0xff]  ;;  %v1423_v38 = vld [vmem:[#allocation2 + $0x148] sm:$0xff] }
  0x1a   :  { %v1433_v24 = vld [vmem:[#allocation2 + $0x198] sm:$0xff]  ;;  %v1431_v39 = vld [vmem:[#allocation2 + $0x188] sm:$0xff]  ;;  %v1414_v40 = vld [vmem:[#allocation2 + $0x100] sm:$0xff] }
  0x1b   :  { %119 = vmatpush.bf16.msra.mxu0 %v1384_v10  ;;  %375 = vmatpush.bf16.msra.mxu3 %v1410_v41  ;;  %v1420_v10 = vld [vmem:[#allocation2 + $0x130] sm:$0xff]  ;;  %v1422_v41 = vld [vmem:[#allocation2 + $0x140] sm:$0xff]  ;;  %v1451_v53 = vld [vmem:[#allocation2 + $0x228] sm:$0xff] }
  0x1c   :  { %205 = vmatpush.bf16.msra.mxu1 %v1392_v16  ;;  %290 = vmatpush.bf16.msra.mxu2 %v1401_v26  ;;  %v1435_v16 = vld [vmem:[#allocation2 + $0x1a8] sm:$0xff]  ;;  %v1424_v26 = vld [vmem:[#allocation2 + $0x150] sm:$0xff] }
  0x1e   :  { %1478 = vset.pattern.permute.xlu0 %v1557_v57  ;;  %v1449_v57 = vld [vmem:[#allocation2 + $0x218] sm:$0xff] }
  0x1f   :  { %120 = vmatpush.bf16.msra.mxu0 %v1383_v15  ;;  %376 = vmatpush.bf16.msra.mxu3 %v1409_v42  ;;  %v1427_v15 = vld [vmem:[#allocation2 + $0x168] sm:$0xff]  ;;  %v1430_v42 = vld [vmem:[#allocation2 + $0x180] sm:$0xff] }
  0x20   :  { %206 = vmatpush.bf16.msra.mxu1 %v1391_v20  ;;  %291 = vmatpush.bf16.msra.mxu2 %v1400_v27  ;;  %v1426_v20 = vld [vmem:[#allocation2 + $0x160] sm:$0xff]  ;;  %v1432_v27 = vld [vmem:[#allocation2 + $0x190] sm:$0xff] }
  0x21   :  { %574 = vperm.xlu0 %1478, %v567_v54   ;;  %v1450_v54 = vld [vmem:[#allocation2 + $0x220] sm:$0xff] }
  0x23   :  { %121 = vmatpush.bf16.msra.mxu0 %v1382_v18  ;;  %377 = vmatpush.bf16.msra.mxu3 %v1408_v43  ;;  %v1438_v18 = vld [vmem:[#allocation2 + $0x1c0] sm:$0xff]  ;;  %v1453_v43 = vld [vmem:[#allocation2 + $0x238] sm:$0xff] }
  0x24   :  { %207 = vmatpush.bf16.msra.mxu1 %v1390_v21  ;;  %292 = vmatpush.bf16.msra.mxu2 %v1399_v36  ;;  %v1434_v21 = vld [vmem:[#allocation2 + $0x1a0] sm:$0xff] }
  0x26   :  { %122 = vmatmul.bf16.vlgmr.msra.gmra.mxu0 %v49_v19  ;;  %v1418_v19 = vld [vmem:[#allocation2 + $0x120] sm:$0xff] }
  0x27   :  { %378 = vmatpush.bf16.msra.mxu3 %v1407_v52  ;;  %460 = vmatpush.bf16.msrb.mxu0 %v1421_v6  ;;  %v1452_v52 = vld [vmem:[#allocation2 + $0x230] sm:$0xff] }
  0x28   :  { %293 = vmatpush.bf16.msra.mxu2 %v1398_v37  ;;  %540 = vmatpush.bf16.msrb.mxu1 %v1429_v7  ;;  %v1415_v37 = vld [vmem:[#allocation2 + $0x108] sm:$0xff] }
  0x2b   :  { %379 = vmatpush.bf16.msra.mxu3 %v1406_v55  ;;  %461 = vmatpush.bf16.msrb.mxu0 %v1420_v10 }
  0x2c   :  { %662 = vmatpush.bf16.msrb.mxu2 %v1445_v56  ;;  %541 = vmatpush.bf16.msrb.mxu1 %v1428_v11 }
  0x2f   :  { %723 = vmatpush.bf16.msrb.mxu3 %v1437_v8  ;;  %462 = vmatpush.bf16.msrb.mxu0 %v1419_v14  ;;  %v1492_v14 = vld [vmem:[%s1689_s4 + $0x5] ss:$0 sm:$0xff] }
  0x30   :  { %663 = vmatpush.bf16.msrb.mxu2 %v1444_v58  ;;  %542 = vmatpush.bf16.msrb.mxu1 %v1427_v15  ;;  %v1448_v58 = vld [vmem:[#allocation2 + $0x210] sm:$0xff] }
  0x33   :  { %724 = vmatpush.bf16.msrb.mxu3 %v1436_v12  ;;  %463 = vmatpush.bf16.msrb.mxu0 %v1418_v19 }
  0x34   :  { %664 = vmatpush.bf16.msrb.mxu2 %v1443_v59  ;;  %543 = vmatpush.bf16.msrb.mxu1 %v1426_v20  ;;  %v1447_v59 = vld [vmem:[#allocation2 + $0x208] sm:$0xff] }
  0x37   :  { %725 = vmatpush.bf16.msrb.mxu3 %v1435_v16  ;;  %464 = vmatpush.bf16.msrb.mxu0 %v1417_v22 }
  0x38   :  { %665 = vmatpush.bf16.msrb.mxu2 %v1442_v60  ;;  %544 = vmatpush.bf16.msrb.mxu1 %v1425_v23  ;;  %v1446_v60 = vld [vmem:[#allocation2 + $0x200] sm:$0xff] }
  0x3b   :  { %726 = vmatpush.bf16.msrb.mxu3 %v1434_v21  ;;  %465 = vmatpush.bf16.msrb.mxu0 %v1416_v25 }
  0x3c   :  { %666 = vmatpush.bf16.msrb.mxu2 %v1441_v5  ;;  %545 = vmatpush.bf16.msrb.mxu1 %v1424_v26 }
  0x3f   :  { %727 = vmatpush.bf16.msrb.mxu3 %v1433_v24  ;;  %466 = vmatpush.bf16.msrb.mxu0 %v1415_v37  ;;  %v1493_v37 = vld [vmem:[%s1688_s3 + $0x6] ss:$0 sm:$0xff] }
  0x40   :  { %667 = vmatpush.bf16.msrb.mxu2 %v1440_v9  ;;  %546 = vmatpush.bf16.msrb.mxu1 %v1423_v38  ;;  %v1491_v9 = vld [vmem:[%s1688_s3 + $0x5] ss:$0 sm:$0xff]  ;;  %v1494_v38 = vld [vmem:[%s1689_s4 + $0x6] ss:$0 sm:$0xff] }
  0x43   :  { %728 = vmatpush.bf16.msrb.mxu3 %v1432_v27  ;;  %467 = vmatpush.bf16.msrb.mxu0 %v1414_v40  ;;  %v1457_v27 = vld [vmem:[#allocation2 + $0x258] sm:$0xff] }
  0x44   :  { %668 = vmatpush.bf16.msrb.mxu2 %v1439_v13  ;;  %547 = vmatpush.bf16.msrb.mxu1 %v1422_v41 }
  0x47   :  { %729 = vmatpush.bf16.msrb.mxu3 %v1431_v39  ;;  %809 = vmatpush.bf16.msra.mxu0 %v1453_v43 }
  0x48   :  { %669 = vmatpush.bf16.msrb.mxu2 %v1438_v18 }
  0x4b   :  { %730 = vmatpush.bf16.msrb.mxu3 %v1430_v42  ;;  %810 = vmatpush.bf16.msra.mxu0 %v1452_v52 }
  0x4f   :  { %811 = vmatpush.bf16.msra.mxu0 %v1451_v53 }
  0x53   :  { %812 = vmatpush.bf16.msra.mxu0 %v1450_v54 }
  0x57   :  { %813 = vmatpush.bf16.msra.mxu0 %v1449_v57 }
  0x5b   :  { %814 = vmatpush.bf16.msra.mxu0 %v1448_v58 }
  0x5f   :  { %815 = vmatpush.bf16.msra.mxu0 %v1447_v59 }
  0x63   :  { %816 = vmatpush.bf16.msra.mxu0 %v1446_v60 }
  0xa3   :  { %v123_v30 = vpop.f32.mrf.mxu0 }
  0xa4   :  { %v129_v31 = vmul.f32 %v1481_v28, %v123_v30  ;;  %v553_v28 = vlaneseq }
  0xa6   :  { %v132_v32 = vadd.f32 %v1482_v29, %v129_v31  ;;  %v570_v29 = vpop.permute.xlu0 %569  ;;  %v1637_v30 = vand.u32 127, %v553_v28  ;;  %v1558_v31 = vmov 0.0   ;;  %v1456_v28 = vld [vmem:[#allocation2 + $0x250] sm:$0xff] }
  0xa8   :  { %v133_v33 = vmax.f32 %v132_v32, 0.0  ;;  %vm571_vm0 = vcmp.eq.s32.totalorder %v1637_v30, %v570_v29  ;;  %vm562_vm2 = vcmp.lt.s32.totalorder %v1637_v30, 16  ;;  %v1455_v29 = vld [vmem:[#allocation2 + $0x248] sm:$0xff] }
  0xa9   :  { %v572_v32 = vsel %vm571_vm0, 1.0, %v1558_v31 }
  0xaa   :  { %v134_v34 = vpack.c.bf16 %v133_v33, %v133_v33 }
  0xab   :  { %v125_v35 = vpop.f32.mrf.mxu0 }
  0xac   :  { %208 = vmatmul.bf16.vlgmr.msra.gmra.mxu1 %v134_v34 }
  0xae   :  { %v575_v33 = vpop.permute.xlu0 %574 }
  0xaf   :  { %vm576_vm1 = vcmp.eq.s32.totalorder %v1637_v30, %v575_v33  ;;  %v1468_v33 = vld [vmem:[#allocation2 + $0x2b0] sm:$0xff]  ;;  %v1467_v30 = vld [vmem:[#allocation2 + $0x2a8] sm:$0xff] }
  0xb0   :  { %v577_v34 = vsel %vm576_vm1, 1.0, %v1558_v31  ;;  %v1454_v31 = vld [vmem:[#allocation2 + $0x240] sm:$0xff] }
  0xb1   :  { %v578_v35 = vadd.f32 %v577_v34, %v572_v32  ;;  %v1469_v32 = vld [vmem:[#allocation2 + $0x2b8] sm:$0xff]  ;;  %v1466_v34 = vld [vmem:[#allocation2 + $0x2a0] sm:$0xff] }
  0xb3   :  { %v579_v36 = vpack.c.bf16 %v578_v35, %v578_v35  ;;  %v1465_v35 = vld [vmem:[#allocation2 + $0x298] sm:$0xff] }
 0x129   :  { %v209_v46 = vpop.f32.mrf.mxu1 }
 0x12a   :  { %v215_v47 = vmul.f32 %v1483_v44, %v209_v46  ;;  %v1487_v44 = vld [vmem:[%s1688_s3 + $0x4] ss:$0 sm:$0xff] }
 0x12c   :  { %v218_v48 = vadd.f32 %v1484_v45, %v215_v47  ;;  %v1488_v45 = vld [vmem:[%s1689_s4 + $0x4] ss:$0 sm:$0xff] }
 0x12e   :  { %v219_v49 = vmax.f32 %v218_v48, 0.0 }
 0x130   :  { %v220_v50 = vpack.c.bf16 %v219_v49, %v219_v49 }
 0x131   :  { %v211_v51 = vpop.f32.mrf.mxu1 }
 0x132   :  { %294 = vmatmul.bf16.vlgmr.msra.gmra.mxu2 %v220_v50 }
 0x133   :  { %981 = vmatpush.bf16.msra.mxu2 %v1469_v32 }
 0x137   :  { %982 = vmatpush.bf16.msra.mxu2 %v1468_v33 }
 0x13b   :  { %983 = vmatpush.bf16.msra.mxu2 %v1467_v30 }
 0x13f   :  { %984 = vmatpush.bf16.msra.mxu2 %v1466_v34 }
 0x142   :  { %670 = vmatmul.bf16.vlgmr.msrb.gmra.mxu2 %v579_v36  ;;  %v1464_v36 = vld [vmem:[#allocation2 + $0x290] sm:$0xff] }
 0x143   :  { %985 = vmatpush.bf16.msra.mxu2 %v1465_v35 }
 0x147   :  { %986 = vmatpush.bf16.msra.mxu2 %v1464_v36 }
 0x1b5   :  { %v295_v63 = vpop.f32.mrf.mxu2 }
 0x1b6   :  { %v301_v0 = vmul.f32 %v1485_v61, %v295_v63  ;;  %v1461_v61 = vld [vmem:[#allocation2 + $0x278] sm:$0xff]  ;;  %v1459_v63 = vld [vmem:[#allocation2 + $0x268] sm:$0xff] }
 0x1b7   :  { %895 = vmatpush.bf16.msra.mxu1 %v1461_v61 }
 0x1b8   :  { %v304_v1 = vadd.f32 %v1486_v62, %v301_v0  ;;  %v1460_v62 = vld [vmem:[#allocation2 + $0x270] sm:$0xff]  ;;  %v1458_v0 = vld [vmem:[#allocation2 + $0x260] sm:$0xff] }
 0x1ba   :  { %v305_v2 = vmax.f32 %v304_v1, 0.0  ;;  %v1490_v1 = vld [vmem:[%s1690_s5 + $0x1] ss:$0 sm:$0xff] }
 0x1bb   :  { %896 = vmatpush.bf16.msra.mxu1 %v1460_v62 }
 0x1bc   :  { %v306_v3 = vpack.c.bf16 %v305_v2, %v305_v2  ;;  %v1489_v2 = vld [vmem:[%s1690_s5] ss:$0 sm:$0xff] }
 0x1bd   :  { %v297_v4 = vpop.f32.mrf.mxu2 }
 0x1be   :  { %380 = vmatmul.bf16.vlgmr.msra.gmra.mxu3 %v306_v3 }
 0x1bf   :  { %897 = vmatpush.bf16.msra.mxu1 %v1459_v63 }
 0x1c3   :  { %898 = vmatpush.bf16.msra.mxu1 %v1458_v0 }
 0x1c5   :  { %v671_v55 = vpop.f32.mrf.mxu2 }
 0x1c7   :  { %899 = vmatpush.bf16.msra.mxu1 %v1457_v27 }
 0x1cb   :  { %900 = vmatpush.bf16.msra.mxu1 %v1456_v28 }
 0x1cd   :  { %v673_v56 = vpop.f32.mrf.mxu2 }
 0x1ce   :  { %v1498_v56 = vld [vmem:[%s1689_s4 + $0x8] ss:$0 sm:$0xff] }
 0x1cf   :  { %901 = vmatpush.bf16.msra.mxu1 %v1455_v29 }
 0x1d3   :  { %902 = vmatpush.bf16.msra.mxu1 %v1454_v31 }
 0x241   :  { %v381_v46 = vpop.f32.mrf.mxu3 }
 0x242   :  { %v387_v47 = vmul.f32 %v1487_v44, %v381_v46  ;;  %v1462_v46 = vld [vmem:[#allocation2 + $0x280] sm:$0xff] }
 0x244   :  { %v390_v48 = vadd.f32 %v1488_v45, %v387_v47  ;;  %v1463_v45 = vld [vmem:[#allocation2 + $0x288] sm:$0xff]  ;;  %v1495_v47 = vld [vmem:[%s1688_s3 + $0x7] ss:$0 sm:$0xff] }
 0x245   :  { %987 = vmatpush.bf16.msra.mxu2 %v1463_v45 }
 0x246   :  { %v391_v49 = vmax.f32 %v390_v48, 0.0  ;;  %v1496_v48 = vld [vmem:[%s1689_s4 + $0x7] ss:$0 sm:$0xff] }
 0x248   :  { %v392_v50 = vpack.c.bf16 %v391_v49, %v391_v49 }
 0x249   :  { %v383_v51 = vpop.f32.mrf.mxu3  ;;  %988 = vmatpush.bf16.msra.mxu2 %v1462_v46 }
 0x24a   :  { %468 = vmatmul.bf16.vlgmr.msrb.gmra.mxu0 %v392_v50  ;;  %548 = vmatmul.bf16.vlgmr.msrb.gmra.mxu1 %v392_v50 }
 0x24b   :  { %731 = vmatmul.bf16.vlgmr.msrb.gmra.mxu3 %v392_v50 }
 0x2c7   :  { %v469_v3 = vpop.f32.mrf.mxu0  ;;  %v549_v4 = vpop.f32.mrf.mxu1 }
 0x2c8   :  { %v550_v5 = vadd.f32 %v1490_v1, %v549_v4  ;;  %v470_v7 = vadd.f32 %v1489_v2, %v469_v3 }
 0x2ca   :  { %v558_v6 = vadd.f32 1e-12, %v550_v5  ;;  %v556_v11 = vmul.f32 %v470_v7, %v470_v7  ;;  %v555_v12 = vadd.f32 1.0, %v550_v5 }
 0x2cc   :  { %v559_v8 = vmul.f32 1.442695, %v558_v6  ;;  %v557_v20 = vsub.f32 %v555_v12, %v556_v11 }
 0x2ce   :  { %1499 = vpow2.f32 %v559_v8  ;;  %v732_v10 = vpop.f32.mrf.mxu3 }
 0x2cf   :  { %v733_v13 = vadd.f32 %v732_v10, %v671_v55  ;;  %v471_v15 = vpop.f32.mrf.mxu0  ;;  %v551_v16 = vpop.f32.mrf.mxu1  ;;  %v1497_v55 = vld [vmem:[%s1688_s3 + $0x8] ss:$0 sm:$0xff] }
 0x2d1   :  { %v738_v18 = vmul.f32 %v1491_v9, %v733_v13 }
 0x2d3   :  { %v741_v19 = vadd.f32 %v1492_v14, %v738_v18 }
 0x2d4   :  { %v1500_v21 = vpop.eup %1499 }
 0x2d5   :  { %v742_v22 = vmax.f32 %v741_v19, 0.0  ;;  %v561_v23 = vsub.f32 %v557_v20, %v1500_v21 }
 0x2d6   :  { %v734_v24 = vpop.f32.mrf.mxu3 }
 0x2d7   :  { %v743_v25 = vpack.c.bf16 %v742_v22, %v742_v22  ;;  %v563_v26 = vsel %vm562_vm2, %v561_v23, 0.0 }
 0x2d8   :  { %564 = vadd.xlane.f32.xlu1 %v563_v26 }
 0x2d9   :  { %817 = vmatmul.bf16.vlgmr.msra.gmra.mxu0 %v743_v25 }
 0x34b   :  { %v565_v0 = vpop.xlane.xlu1 %564 }
 0x34c   :  { %v566_v2 = vmul.f32 -0.5, %v565_v0 }
 0x356   :  { %v818_v39 = vpop.f32.mrf.mxu0 }
 0x357   :  { %v824_v40 = vmul.f32 %v1493_v37, %v818_v39 }
 0x359   :  { %v827_v41 = vadd.f32 %v1494_v38, %v824_v40 }
 0x35b   :  { %v828_v42 = vmax.f32 %v827_v41, 0.0 }
 0x35d   :  { %v829_v43 = vpack.c.bf16 %v828_v42, %v828_v42 }
 0x35e   :  { %v820_v44 = vpop.f32.mrf.mxu0 }
 0x35f   :  { %903 = vmatmul.bf16.vlgmr.msra.gmra.mxu1 %v829_v43 }
 0x3dc   :  { %v904_v49 = vpop.f32.mrf.mxu1 }
 0x3dd   :  { %v910_v50 = vmul.f32 %v1495_v47, %v904_v49 }
 0x3df   :  { %v913_v51 = vadd.f32 %v1496_v48, %v910_v50 }
 0x3e1   :  { %v914_v52 = vmax.f32 %v913_v51, 0.0 }
 0x3e3   :  { %v915_v53 = vpack.c.bf16 %v914_v52, %v914_v52 }
 0x3e4   :  { %v906_v54 = vpop.f32.mrf.mxu1 }
 0x3e5   :  { %989 = vmatmul.bf16.vlgmr.msra.gmra.mxu2 %v915_v53 }
 0x468   :  { %v990_v57 = vpop.f32.mrf.mxu2 }
 0x469   :  { %v996_v58 = vmul.f32 %v1497_v55, %v990_v57 }
 0x46b   :  { %v999_v59 = vadd.f32 %v1498_v56, %v996_v58 }
 0x46d   :  { %v1000_v60 = vmax.f32 %v999_v59, 0.0 }
 0x46f   :  { %1007 = vst [vmem:[#allocation5] sm:$0xff] %v1000_v60  ;;  %v1001_v61 = vsub.f32 %v1000_v60, %v1612_v17 }
 0x470   :  { %v992_v62 = vpop.f32.mrf.mxu2  ;;  %1019 = dma.vmem_to_hbm [thread:$0]  %s1015_s1, 128, %s1017_s26, [#allocation4]  }
 0x471   :  { %v1002_v63 = vmul.f32 %v1001_v61, %v1001_v61 }
 0x473   :  { %1003 = vadd.xlane.f32.xlu1 %v1002_v63 }
 0x4e6   :  { %v1004_v1 = vpop.xlane.xlu1 %1003 }
 0x4e7   :  { %v1005_v3 = vmul.f32 0.03125, %v1004_v1 }
 0x4e9   :  { %v1006_v4 = vadd.f32 %v1005_v3, %v566_v2 }
 0x4eb   :  { %1008 = vst [vmem:[%s1692_s7] sm:$0xff] %v1006_v4 }
 0x4ec   :  { %1551 = dma.done.wait [#allocation4], 128  }
 0x4ed   :  { %1552 = vsyncadd [#allocation4], 4294967168 }
 0x4ee   :  { %1028 = vsyncpa [#allocation3], 1 }
 0x4ef   :  { %1029 = vsyncpa [#allocation4], 1 }

</bundles_post_ra>
